<compile_context>
chip_gen: v5e
topology: v5e:2x2
jax: 0.10.0
libtpu: 0.0.40
codegen_flags: <defaults>
</compile_context>

<pallas_src>
import functools
import math

import jax
import jax.numpy as jnp
from jax.experimental import pallas as pl
from jax.experimental.pallas import tpu as pltpu


def _layernorm_kernel(x_ref, gamma_ref, beta_ref, o_ref, *, eps, d_valid):
    """x_ref/o_ref: (TR, Dp) tiles; gamma_ref/beta_ref: (1, Dp), resident.

    out = gamma * (x - mean) / sqrt(var + eps) + beta
    mean/var per row over the first `d_valid` lanes (biased variance, matching
    torch.var(unbiased=False)).  Padded lanes (>= d_valid) hold zeros on input
    and produce zeros on output (sliced off in the wrapper).
    """
    x = x_ref[...].astype(jnp.float32)                       # (TR, Dp)
    dp = x.shape[-1]

    if d_valid == dp:
        # Production path: D is a multiple of 128, no masking needed.
        mean = jnp.mean(x, axis=-1, keepdims=True)           # (TR, 1)
        xc = x - mean
        var = jnp.mean(xc * xc, axis=-1, keepdims=True)
    else:
        # Padded path: lanes >= d_valid are zero; divide by the true D and
        # mask the centered values so padding doesn't pollute the variance.
        inv_d = 1.0 / d_valid
        mean = jnp.sum(x, axis=-1, keepdims=True) * inv_d    # padded lanes add 0
        lane = jax.lax.broadcasted_iota(jnp.int32, (1, dp), 1)
        mask = lane < d_valid
        xc = jnp.where(mask, x - mean, 0.0)
        var = jnp.sum(xc * xc, axis=-1, keepdims=True) * inv_d

    inv = jax.lax.rsqrt(var + eps)                           # EUP rsqrt (free slot)
    gamma = gamma_ref[...].astype(jnp.float32)               # (1, Dp) broadcasts
    beta = beta_ref[...].astype(jnp.float32)
    o_ref[...] = (gamma * (xc * inv) + beta).astype(o_ref.dtype)


def _pick_block_rows(n_rows, d, itemsize, *, target_bytes=4 * 1024 * 1024,
                     min_steps=8):
    """Rows per block: ~target_bytes of I/O per step in the *input* dtype,
    multiple of 8, and small enough to give >= min_steps grid steps (when the
    row count allows) so both v7x TensorCores get work."""
    if n_rows <= 8:
        return n_rows                               # full extent, single step
    tr = (target_bytes // (itemsize * d)) // 8 * 8
    tr = max(8, tr)
    cap = max(8, (n_rows // min_steps) // 8 * 8)    # keep the grid multi-step
    tr = min(tr, cap)
    return min(tr, n_rows)


def layer_norm(x, gamma, beta, *, eps=1e-12, block_rows=None,
               target_block_bytes=4 * 1024 * 1024):
    """LayerNorm over the last axis of x. x: (..., D); gamma, beta: (D,)."""
    orig_shape = x.shape
    D = orig_shape[-1]
    N = math.prod(orig_shape[:-1]) if len(orig_shape) > 1 else 1

    x2 = x.reshape(N, D)
    g2 = gamma.reshape(1, D)
    b2 = beta.reshape(1, D)

    # Lane-dense layout: pad the feature dim to a multiple of 128 so the
    # output store is full unmasked vregs.  No-op when D % 128 == 0.
    Dp = pl.cdiv(D, 128) * 128
    if Dp != D:
        x2 = jnp.pad(x2, ((0, 0), (0, Dp - D)))
        g2 = jnp.pad(g2, ((0, 0), (0, Dp - D)))
        b2 = jnp.pad(b2, ((0, 0), (0, Dp - D)))

    if block_rows is None:
        block_rows = _pick_block_rows(N, Dp, x.dtype.itemsize,
                                      target_bytes=target_block_bytes)
    block_rows = min(block_rows, N)

    grid = (pl.cdiv(N, block_rows),)

    out2 = pl.pallas_call(
        functools.partial(_layernorm_kernel, eps=float(eps), d_valid=D),
        out_shape=jax.ShapeDtypeStruct((N, Dp), x.dtype),
        grid=grid,
        in_specs=[
            pl.BlockSpec((block_rows, Dp), lambda i: (i, 0)),   # x rows
            pl.BlockSpec((1, Dp), lambda i: (0, 0)),            # gamma (resident)
            pl.BlockSpec((1, Dp), lambda i: (0, 0)),            # beta  (resident)
        ],
        out_specs=pl.BlockSpec((block_rows, Dp), lambda i: (i, 0)),
        compiler_params=pltpu.CompilerParams(
            # Rows are independent -> shard the grid across v7x's two cores.
            dimension_semantics=("parallel",),
            # ~4 MiB blocks: 2x2 pipelined buffers + f32 temporaries stay well
            # under this; 48 MiB is legal on v5e/v6e (128 MiB) and leaves
            # headroom for internal scratch on v7x (64 MiB physical).
            vmem_limit_bytes=48 * 1024 * 1024,
        ),
    )(x2, g2, b2)

    if Dp != D:
        out2 = out2[:, :D]
    return out2.reshape(orig_shape)


def _reference(x, gamma, beta, eps):
    xf = x.astype(jnp.float32)
    mean = jnp.mean(xf, axis=-1, keepdims=True)
    var = jnp.mean((xf - mean) ** 2, axis=-1, keepdims=True)   # unbiased=False
    out = gamma.astype(jnp.float32) * ((xf - mean) / jnp.sqrt(var + eps)) \
        + beta.astype(jnp.float32)
    return out.astype(x.dtype)


if __name__ == "__main__":
    EPS = 1e-12
    key = jax.random.PRNGKey(0)

    ok = True
    # (shape, dtype, tolerance): small-D padded path, production-D dense path,
    # and a bf16 run to exercise dtype-aware block sizing.
    cases = [
        ((2, 8, 32), jnp.float32, 1e-5),
        ((2, 8, 128), jnp.float32, 1e-5),
        ((2, 8, 128), jnp.bfloat16, 2e-2),
    ]
    for shape, dtype, tol in cases:
        D = shape[-1]
        k1, k2, k3, key = jax.random.split(key, 4)
        x = jax.random.normal(k1, shape, dtype=jnp.float32).astype(dtype)
        gamma = (1.0 + 0.1 * jax.random.normal(k2, (D,), jnp.float32)).astype(dtype)
        beta = (0.1 * jax.random.normal(k3, (D,), jnp.float32)).astype(dtype)

        out = layer_norm(x, gamma, beta, eps=EPS)
        out = jax.block_until_ready(out)
        ref = _reference(x, gamma, beta, EPS)

        assert out.shape == x.shape
        err = float(jnp.max(jnp.abs(out.astype(jnp.float32)
                                    - ref.astype(jnp.float32))))
        if err > tol:
            ok = False
            print(f"FAIL shape={shape} dtype={dtype} max_err={err}")

    if ok:
        print("KERNEL_OK")
</pallas_src>

<mosaic_0001>
module attributes {stable_mosaic.version = 11 : i64} {
  func.func @_layernorm_kernel(%arg0: i32, %arg1: memref<8x128xf32, #tpu.memory_space<vmem>>, %arg2: memref<1x128xf32, #tpu.memory_space<vmem>>, %arg3: memref<1x128xf32, #tpu.memory_space<vmem>>, %arg4: memref<8x128xf32, #tpu.memory_space<vmem>>) attributes {dimension_semantics = [#tpu.dimension_semantics<parallel>], iteration_bounds = array<i64: 2>, scalar_prefetch = 0 : i64, scratch_operands = 0 : i64, tpu.core_type = #tpu.core_type<tc>, window_params = [{transform_indices = @transform_0, window_bounds = array<i64: 8, 128>}, {pipeline_mode = #tpu.pipeline_mode<synchronous>, transform_indices = @transform_1, window_bounds = array<i64: 1, 128>}, {pipeline_mode = #tpu.pipeline_mode<synchronous>, transform_indices = @transform_2, window_bounds = array<i64: 1, 128>}, {transform_indices = @transform_3, window_bounds = array<i64: 8, 128>}]} {
    %c0 = arith.constant 0 : index
    %c0_0 = arith.constant 0 : index
    %0 = vector.load %arg1[%c0, %c0_0] : memref<8x128xf32, #tpu.memory_space<vmem>>, vector<8x128xf32>
    %cst = arith.constant dense<0.000000e+00> : vector<8xf32>
    %1 = vector.multi_reduction <add>, %0, %cst [1] : vector<8x128xf32> to vector<8xf32>
    %2 = vector.shape_cast %1 : vector<8xf32> to vector<8x1xf32>
    %cst_1 = arith.constant 3.125000e-02 : f32
    %3 = vector.broadcast %cst_1 : f32 to vector<8x1xf32>
    %4 = arith.mulf %2, %3 : vector<8x1xf32>
    %5 = tpu.iota {dimensions = array<i32: 1>} : vector<1x128xi32>
    %c32_i32 = arith.constant 32 : i32
    %6 = vector.broadcast %c32_i32 : i32 to vector<1x128xi32>
    %7 = arith.cmpi slt, %5, %6 : vector<1x128xi32>
    %8 = vector.broadcast %4 : vector<8x1xf32> to vector<8x128xf32>
    %9 = arith.subf %0, %8 : vector<8x128xf32>
    %cst_2 = arith.constant 0.000000e+00 : f32
    %10 = vector.shape_cast %7 : vector<1x128xi1> to vector<1x128xi1>
    %11 = vector.broadcast %10 : vector<1x128xi1> to vector<8x128xi1>
    %12 = vector.broadcast %cst_2 : f32 to vector<8x128xf32>
    %13 = arith.select %11, %9, %12 : vector<8x128xi1>, vector<8x128xf32>
    %14 = arith.mulf %13, %13 : vector<8x128xf32>
    %cst_3 = arith.constant dense<0.000000e+00> : vector<8xf32>
    %15 = vector.multi_reduction <add>, %14, %cst_3 [1] : vector<8x128xf32> to vector<8xf32>
    %16 = vector.shape_cast %15 : vector<8xf32> to vector<8x1xf32>
    %cst_4 = arith.constant 3.125000e-02 : f32
    %17 = vector.broadcast %cst_4 : f32 to vector<8x1xf32>
    %18 = arith.mulf %16, %17 : vector<8x1xf32>
    %cst_5 = arith.constant 9.99999996E-13 : f32
    %19 = vector.broadcast %cst_5 : f32 to vector<8x1xf32>
    %20 = arith.addf %18, %19 : vector<8x1xf32>
    %21 = math.rsqrt %20 : vector<8x1xf32>
    %c0_6 = arith.constant 0 : index
    %c0_7 = arith.constant 0 : index
    %22 = vector.load %arg2[%c0_6, %c0_7] : memref<1x128xf32, #tpu.memory_space<vmem>>, vector<1x128xf32>
    %c0_8 = arith.constant 0 : index
    %c0_9 = arith.constant 0 : index
    %23 = vector.load %arg3[%c0_8, %c0_9] : memref<1x128xf32, #tpu.memory_space<vmem>>, vector<1x128xf32>
    %24 = vector.broadcast %21 : vector<8x1xf32> to vector<8x128xf32>
    %25 = arith.mulf %13, %24 : vector<8x128xf32>
    %26 = vector.broadcast %22 : vector<1x128xf32> to vector<8x128xf32>
    %27 = arith.mulf %26, %25 : vector<8x128xf32>
    %28 = vector.broadcast %23 : vector<1x128xf32> to vector<8x128xf32>
    %29 = arith.addf %27, %28 : vector<8x128xf32>
    %c0_10 = arith.constant 0 : index
    %c0_11 = arith.constant 0 : index
    %30 = vector.load %arg4[%c0_10, %c0_11] : memref<8x128xf32, #tpu.memory_space<vmem>>, vector<8x128xf32>
    tpu.vector_store %arg4[%c0_10, %c0_11], %29 {strides = array<i32>} : memref<8x128xf32, #tpu.memory_space<vmem>>, vector<8x128xf32>,
    return
  }
  func.func @transform_0(%arg0: i32) -> (i32, i32) {
    %c0_i32 = arith.constant 0 : i32
    %c0_i32_0 = arith.constant 0 : i32
    return %arg0, %c0_i32 : i32, i32
  }
  func.func @transform_1(%arg0: i32) -> (i32, i32) {
    %c0_i32 = arith.constant 0 : i32
    %c0_i32_0 = arith.constant 0 : i32
    %c0_i32_1 = arith.constant 0 : i32
    return %c0_i32, %c0_i32_0 : i32, i32
  }
  func.func @transform_2(%arg0: i32) -> (i32, i32) {
    %c0_i32 = arith.constant 0 : i32
    %c0_i32_0 = arith.constant 0 : i32
    %c0_i32_1 = arith.constant 0 : i32
    return %c0_i32, %c0_i32_0 : i32, i32
  }
  func.func @transform_3(%arg0: i32) -> (i32, i32) {
    %c0_i32 = arith.constant 0 : i32
    %c0_i32_0 = arith.constant 0 : i32
    return %arg0, %c0_i32 : i32, i32
  }
}

</mosaic_0001>

<bundles_post_ra>
// kernel: tpu_custom_call.1
= control target key start
LH: loop header
LB: loop body
LE: loop exit
PB: predicated region body
PF: predicated region fallthrough
CT: control target
= control target key end

     0   :  { %8 = vsyncpa [#allocation3], 0  ;;  %s710_s0 = inlined_call_operand.hbm [shape: f32[16,128], index: 0, kind: input, shape index: {}]   ;;  %s711_s1 = inlined_call_operand.hbm [shape: f32[1,128], index: 1, kind: input, shape index: {}]   ;;  %s712_s2 = inlined_call_operand.vmem [shape: f32[1,128], index: 2, kind: input, shape index: {}]   ;;  %s713_s3 = inlined_call_operand.hbm [shape: f32[16,128], index: 3, kind: output, shape index: {}]  }
   0x1   :  { %10 = vsyncpa [#allocation3 + $0x1], 0 }
   0x2   :  { %11 = vsyncpa [#allocation6], 0 }
   0x3   :  { %12 = vsyncpa [#allocation4], 0 }
   0x4   :  { %14 = vsyncpa [#allocation4 + $0x1], 0  ;;  %s565_s12 = smov 0   ;;  %s567_s13 = smov 0  }
   0x5   :  { %s569_s14 = smov 0   ;;  %s571_s15 = smov 0  }
   0x6 LB: > { %s586_s16 = sadd.s32 4294967295, %s542_s15   ;;  %s337_s17 = sadd.s32 4294967294, %s542_s15   ;;  %s542_s15 = sphi %s571_s15, %s723_s15   ;;  %s538_s14 = sphi %s569_s14, %s722_s14   ;;  %s534_s13 = sphi %s567_s13, %s721_s13   ;;  %s530_s12 = sphi %s565_s12, %s720_s12  }
   0x7   : > { %p40_p0 = scmp.ne.s32.totalorder %s534_s13, %s530_s12  ;;  %p41_p1 = scmp.eq.s32.totalorder %s586_s16, 0 }
   0x8   : > { %p106_p2 = scmp.eq.s32.totalorder %s586_s16, 1  ;;  %p112_p3 = scmp.eq.s32.totalorder %s337_s17, 1 }
   0x9   : > { %p595_p4 = por %p41_p1, %p40_p0  ;;  %p338_p5 = scmp.ge.s32.totalorder %s542_s15, 1 }
   0xa   : > { %p600_p6 = por %p112_p3, %p40_p0  ;;  %p119_p7 = scmp.lt.s32.totalorder %s542_s15, 3 }
   0xb   : > { %s131_s22 = sshll.u32 %s711_s1, 4  ;;  %s544_s24 = smov [#allocation5]   ;;  %s132_s22 = int_to_ptr.hbm [resolvable:$true] %s131_s22 }
   0xc   : > { %p608_p8 = pnand %p338_p5, %p119_p7  ;;  %s133_s25 = sshll.u32 %s544_s24, 4  ;;  %s134_s25 = int_to_ptr.vmem [resolvable:$true] %s133_s25 }
   0xd   : > { %s618_s26 = sadd.s32 1, %s542_s15   ;;  %s27_s27 = sadd.s32 1, %s538_s14 }
   0xe   : > { %p359_p10 = pneg %p608_p8  ;;  %s24_s28 = ssub.s32 %s542_s15, %s618_s26 }
   0xf   : > { %p25_p12 = scmp.eq.s32.totalorder %s24_s28, 0  ;;  %p34_p13 = scmp.ne.s32.totalorder %s538_s14, %s534_s13 }
  0x10   : > { %p360_p11 = pnand %p359_p10, %p41_p1  ;;  %p35_p0 = scmp.eq.s32.totalorder %s542_s15, 0 }
  0x11   : > { %s627_s29 = scalar_select %p25_p12, %s538_s14, %s27_s27  }
  0x12   : > { %362 = dma.hbm_to_vmem [thread:$0]  (!%p360_p11), %s132_s22, 16, %s134_s25, [#allocation6]  }
  0x13   : > { %p631_p3 = por %p106_p2, %p34_p13  ;;  %p372_p5 = scmp.lt.s32.totalorder %s542_s15, 2 }
  0x14   : > { %s147_s4 = sand.u32 1, %s538_s14   ;;  %s342_s5 = sshll.u32 %s542_s15, 3 }
  0x15   : > { %p36_p7 = por %p35_p0, %p34_p13  ;;  %s341_s6 = sshll.u32 %s147_s4, 3 }
  0x16   : > { %s155_s9 = scalar_lea.hbm %s710_s0, %s342_s5  ;;  %s151_s11 = scalar_lea.vmem [#allocation2], %s341_s6 }
  0x17   : > { %s157_s10 = sshll.u32 %s155_s9, 4  ;;  %s159_s17 = sshll.u32 %s151_s11, 4  ;;  %s158_s10 = int_to_ptr.hbm [resolvable:$true] %s157_s10  ;;  %s160_s17 = int_to_ptr.vmem [resolvable:$true] %s159_s17 }
  0x18   : > { %p641_p10 = pnand %p372_p5, %p36_p7  ;;  %s148_s21 = scalar_lea.sflag [#allocation3], %s147_s4 }
  0x19   : > { %s442_s22 = sshra.s32 %s158_s10, 4  ;;  %s449_s28 = scalar_lea.hbm %s710_s0, 16  ;;  %s443_s22 = int_to_ptr.hbm [resolvable:$true] %s442_s22 }
  0x1a   : > { %s444_s24 = scalar_lea.hbm %s443_s22, 8  ;;  %p446_p11 = pneg %p641_p10 }
  0x1b   : > { %p445_p2 = scmp.ne.s32.totalorder %s443_s22, %s444_s24  ;;  %p450_p0 = scmp.lt.s32.totalorder %s443_s22, %s710_s0 }
  0x1c   : > { %p451_p5 = scmp.lt.s32.totalorder %s449_s28, %s444_s24 }
  0x1d   : > { %p447_p12 = pnand %p446_p11, %p445_p2 }
  0x1e   : > { %p452_p7 = por %p451_p5, %p450_p0 }
  0x1f   : > { %p448_p13 = pneg %p447_p12 }
  0x21   : > { %p453_p9 = pnand %p452_p7, %p448_p13 }
  0x23   : > { %456 = shalt.err (!%p453_p9)
}
  0x24   : > { %366 = dma.hbm_to_vmem [thread:$0]  (!%p641_p10), %s158_s10, 128, %s160_s17, %s148_s21  }
  0x25   : > { %168 = sbr.rel (%p608_p8) target bundleno = 316 (0x13c), region = 32  ;;  %s658_s4 = sand.u32 (!%p608_p8), 1, %s534_s13  }
  0x26   : > { %s344_s7 = sshll.u32 (!%p608_p8), %s658_s4, 3  ;;  %s171_s8 = scalar_lea.sflag (!%p608_p8), [#allocation3], %s658_s4 }
  0x27   : > { %s174_s9 = scalar_lea.vmem (!%p608_p8), [#allocation2], %s344_s7 }
  0x2a   : > { %517 = dma.done.wait (%p595_p4), %s171_s8, 128  }
  0x2b   : > { %519 = vsyncadd (%p595_p4), %s171_s8, 4294967168 }
  0x2c   : > { %521 = dma.done.wait (%p41_p1), [#allocation6], 16  }
  0x2d   : > { %523 = vsyncadd (%p41_p1), [#allocation6], 4294967280  ;;  %v203_v0 = vld [vmem:[%s174_s9] sm:$0xff]  ;;  %v207_v1 = vlaneseq  ;;  %s348_s18 = sshll.u32 %s586_s16, 3  ;;  %v408_v17 = vld [vmem:[#allocation5] ss:$0 sm:$0xff] }
  0x2e   : > { %204 = vadd.xlane.f32.xlu0 %v203_v0  ;;  %s252_s11 = scalar_lea.hbm %s713_s3, %s348_s18  ;;  %v409_v20 = vld [vmem:[%s712_s2] ss:$0 sm:$0xff]  ;;  %s202_s21 = scalar_lea.vmem [#allocation7], %s344_s7 }
  0x2f   : > { %v208_v2 = vand.u32 127, %v207_v1  ;;  %s254_s22 = sshll.u32 %s202_s21, 4  ;;  %s256_s16 = sshll.u32 %s252_s11, 4  ;;  %s255_s22 = int_to_ptr.vmem [resolvable:$true] %s254_s22  ;;  %s257_s16 = int_to_ptr.hbm [resolvable:$true] %s256_s16 }
  0x30   : > { %s242_s24 = scalar_lea.sflag [#allocation4], %s658_s4  ;;  %s486_s25 = sshra.s32 %s257_s16, 4  ;;  %s487_s25 = int_to_ptr.hbm [resolvable:$true] %s486_s25 }
  0x31   : > { %vm209_vm0 = vcmp.lt.s32.totalorder %v208_v2, 32  ;;  %s488_s27 = scalar_lea.hbm %s487_s25, 8  ;;  %s492_s6 = scalar_lea.hbm %s713_s3, 16 }
  0x32   : > { %p489_p1 = scmp.ne.s32.totalorder %s487_s25, %s488_s27  ;;  %p493_p9 = scmp.lt.s32.totalorder %s487_s25, %s713_s3 }
  0x33   : > { %p494_p10 = scmp.lt.s32.totalorder %s492_s6, %s488_s27 }
  0x34   : > { %p490_p4 = pnand %p489_p1, %p631_p3 }
  0x35   : > { %p495_p2 = por %p494_p10, %p493_p9 }
  0x36   : > { %p491_p8 = pneg %p490_p4 }
  0x38   : > { %p496_p11 = pnand %p495_p2, %p491_p8 }
  0xa1   : > { %v205_v3 = vpop.xlane.xlu0 %204 }
  0xa2   : > { %v206_v4 = vmul.f32 0.03125, %v205_v3 }
  0xa4   : > { %v210_v5 = vsub.f32 %v203_v0, %v206_v4 }
  0xa6   : > { %v213_v6 = vsel %vm209_vm0, %v210_v5, 0.0 }
  0xa7   : > { %v214_v7 = vmul.f32 %v213_v6, %v213_v6 }
  0xa9   : > { %215 = vadd.xlane.f32.xlu0 %v214_v7 }
 0x11c   : > { %v216_v8 = vpop.xlane.xlu0 %215 }
 0x11d   : > { %v217_v9 = vmul.f32 0.03125, %v216_v8 }
 0x11f   : > { %v218_v10 = vadd.f32 1e-12, %v217_v9 }
 0x121   : > { %410 = vrsqrt.f32 %v218_v10  ;;  %vm225_vm2 = vweird.f32 %v218_v10 }
 0x127   : > { %v411_v11 = vpop.eup %410 }
 0x128   : > { %v220_v12 = vmul.f32 %v411_v11, %v218_v10  ;;  %vm226_vm1 = vweird.f32 %v411_v11 }
 0x129   : > { %vm227_vm3 = vmor %vm225_vm2, %vm226_vm1 }
 0x12a   : > { %v221_v13 = vmul.f32 %v411_v11, %v220_v12 }
 0x12c   : > { %v222_v14 = vmul.f32 0.5, %v221_v13 }
 0x12e   : > { %v223_v15 = vsub.f32 1.5, %v222_v14 }
 0x130   : > { %v224_v16 = vmul.f32 %v411_v11, %v223_v15 }
 0x132   : > { %v228_v18 = vsel %vm227_vm3, %v411_v11, %v224_v16 }
 0x133   : > { %v231_v19 = vmul.f32 %v228_v18, %v213_v6 }
 0x135   : > { %v235_v21 = vmul.f32 %v408_v17, %v231_v19 }
 0x137   : > { %v239_v22 = vadd.f32 %v409_v20, %v235_v21 }
 0x139   : > { %240 = vst [vmem:[%s202_s21] sm:$0xff] %v239_v22 }
 0x13a   : > { %499 = shalt.err (!%p496_p11)
}
 0x13b   : > { %357 = dma.vmem_to_hbm [thread:$0]  (%p631_p3), %s255_s22, 128, %s257_s16, %s242_s24  }
 0x13c PF: > { %s268_s4 = sand.u32 1, %s530_s12   ;;  %p719_p12 = scmp.ge.s32.totalorder %s542_s15, 2 }
 0x13d   : > { %s269_s9 = scalar_lea.sflag [#allocation4], %s268_s4 }
 0x13e   : > { %p368_p13 = pnand %p719_p12, %p600_p6 }
 0x140   : > { %p369_p0 = pneg %p368_p13 }
 0x142   : > { %525 = dma.done.wait (%p369_p0), %s269_s9, 128  }
 0x143   : > { %527 = vsyncadd (%p369_p0), %s269_s9, 4294967168  ;;  %p17_p5 = scmp.ge.s32.totalorder %s618_s26, 4   ;;  %s720_s12 = smov %s534_s13 }
 0x144   : > { %s721_s13 = smov %s538_s14  ;;  %s722_s14 = smov %s627_s29 }
 0x145   : > { %s723_s15 = smov %s618_s26  ;;  %19 = sbr.rel (!%p17_p5) target bundleno = 6 (0x6), region = 81 }
 0x14a   :  { %275 = vsyncpa [#allocation3], 1 }
 0x14b   :  { %277 = vsyncpa [#allocation3 + $0x1], 1 }
 0x14c   :  { %278 = vsyncpa [#allocation6], 1 }
 0x14d   :  { %279 = vsyncpa [#allocation4], 1 }
 0x14e   :  { %281 = vsyncpa [#allocation4 + $0x1], 1 }

</bundles_post_ra>
